<compile_context>
chip_gen: v5e
topology: v5e:2x2
jax: 0.10.0
libtpu: 0.0.40
codegen_flags: <defaults>
</compile_context>

<pallas_src>
import functools

import jax
import jax.numpy as jnp
from jax.experimental import pallas as pl
from jax.experimental.pallas import tpu as pltpu


def lr_kernel(xp_ref, wbd_ref, b_ref, o_ref):
    """One batch tile.

    xp_ref : (TBP, 128) f32  packed features, P logical rows per packed row
    wbd_ref: (128, P)   f32  resident block-diagonal weight
    b_ref  : (1, 1)     f32  bias scalar (SMEM)
    o_ref  : (TBP, P)   f32  probabilities
    """
    # Packed tile is the MXU LHS (no transpose); the block-diagonal RHS makes
    # the MXU do the per-logical-row reduction.
    z = jnp.dot(xp_ref[...], wbd_ref[...], preferred_element_type=jnp.float32)
    z = z + b_ref[0, 0]
    # sigmoid(z) = 0.5*(tanh(z/2)+1): a single EUP op per vreg (vs exp+recip),
    # keeps the EUP slot well under the per-tile DMA slack on v7x.
    o_ref[...] = (0.5 * jnp.tanh(0.5 * z) + 0.5).astype(o_ref.dtype)


def _next_pow2(n: int) -> int:
    return 1 if n <= 1 else 1 << (n - 1).bit_length()


@functools.partial(jax.jit, static_argnames=("block_rows",))
def lr_forward(x, w, b, *, block_rows=None):
    """x: [B, F] f32, w: [F, 1] f32, b: [1, 1] f32  ->  [B, 1] f32."""
    B, F = x.shape
    if F > 128:
        # TODO(synk): n_features > 128 would need a lane-chunked (K-tiled) kernel.
        raise NotImplementedError("lr_forward supports n_features <= 128")

    f_pad = _next_pow2(F)        # divisor of 128
    pack = 128 // f_pad          # logical rows per packed 128-lane row

    x = x.astype(jnp.float32)
    w_col = jnp.reshape(w, (F, 1)).astype(jnp.float32)
    b_s = jnp.reshape(b, (1, 1)).astype(jnp.float32)

    # Pad batch to a multiple of `pack` and features to f_pad, then pack
    # `pack` consecutive rows into each 128-lane row.  For F a power of two
    # and B % pack == 0 this is a zero-copy row-major reshape.
    bp = pl.cdiv(B, pack) * pack
    if bp != B or f_pad != F:
        x = jnp.pad(x, ((0, bp - B), (0, f_pad - F)))
    bp_rows = bp // pack
    xp = jnp.reshape(x, (bp_rows, 128))

    # Block-diagonal weight [128, pack]: column j carries w in lanes
    # [j*f_pad, j*f_pad + F), so z[p, j] = <x[pack*p + j, :], w>.
    w_blk = jnp.pad(w_col, ((0, f_pad - F), (0, 0)))            # [f_pad, 1]
    wbd = jnp.kron(jnp.eye(pack, dtype=jnp.float32), w_blk)     # [128, pack]

    # ---- tile sizing (packed rows per grid step) --------------------------
    if block_rows is None:
        tbp = 8192                              # 4 MiB dense input tile
    else:
        tbp = max(block_rows // pack, 8)
    tbp = min(tbp, 16384, bp_rows)              # cap input buffer at 8 MiB
    if tbp < bp_rows:
        tbp = max((tbp // 8) * 8, 8)            # (8,128) rule for partial grids
    elif bp_rows >= 2048:
        # Whole batch fits one step but there is plenty of data: split so both
        # v7x TensorCores get work on the "parallel" batch axis.
        tbp = ((bp_rows + 1) // 2 + 7) // 8 * 8

    grid = (pl.cdiv(bp_rows, tbp),)

    # Scoped-VMEM budget on the *padded* layout: the (tbp, pack) output block
    # is lane-padded to 128 lanes, so it costs as much VMEM as the input tile.
    tile_b = tbp * 128 * 4                       # packed x tile (dense)
    out_b = tbp * 128 * 4                        # (tbp, pack) lane-padded
    w_b = 128 * 128 * 4
    footprint = 2 * (tile_b + out_b + w_b)       # double-buffered
    vmem_limit = (footprint + (8 << 20)) if footprint > (12 << 20) else None

    out_packed = pl.pallas_call(
        lr_kernel,
        out_shape=jax.ShapeDtypeStruct((bp_rows, pack), jnp.float32),
        grid_spec=pltpu.PrefetchScalarGridSpec(
            num_scalar_prefetch=0,
            grid=grid,
            in_specs=[
                pl.BlockSpec((tbp, 128), lambda i: (i, 0)),          # x tile
                pl.BlockSpec((128, pack), lambda i: (0, 0)),         # resident W
                pl.BlockSpec(memory_space=pltpu.MemorySpace.SMEM),   # bias
            ],
            out_specs=pl.BlockSpec((tbp, pack), lambda i: (i, 0)),
        ),
        compiler_params=pltpu.CompilerParams(
            dimension_semantics=("parallel",),   # megacore sharding on v7x
            vmem_limit_bytes=vmem_limit,
        ),
    )(xp, wbd, b_s)

    # (bp_rows, pack) row-major is exactly logical row order; drop batch pad.
    return jnp.reshape(out_packed, (bp, 1))[:B]


if __name__ == "__main__":
    key = jax.random.PRNGKey(0)
    kx, kw, kb, kx2, kw2, kb2 = jax.random.split(key, 6)

    # Case 1: Titanic-style head, F=32 (pack=4, zero-copy packing), tiny batch.
    batch, n_features = 8, 32
    bound = 1.0 / (n_features ** 0.5)
    x = jax.random.normal(kx, (batch, n_features), dtype=jnp.float32)
    w = jax.random.uniform(kw, (n_features, 1), jnp.float32, -bound, bound)
    b = jax.random.uniform(kb, (1, 1), jnp.float32, -bound, bound)

    out = jax.block_until_ready(lr_forward(x, w, b))
    ref = jax.nn.sigmoid(x @ w + b)
    assert out.shape == (batch, 1)
    # Tolerance covers the MXU's default bf16-pass f32 matmul.
    assert jnp.allclose(out, ref, atol=3e-3), float(jnp.max(jnp.abs(out - ref)))

    # Case 2: exercises feature padding (F=7 -> 8, pack=16), batch padding
    # (1000 -> 1008), a multi-step grid and a partial final tile.
    batch2, nf2 = 1000, 7
    bound2 = 1.0 / (nf2 ** 0.5)
    x2 = jax.random.normal(kx2, (batch2, nf2), dtype=jnp.float32)
    w2 = jax.random.uniform(kw2, (nf2, 1), jnp.float32, -bound2, bound2)
    b2 = jax.random.uniform(kb2, (1, 1), jnp.float32, -bound2, bound2)

    out2 = jax.block_until_ready(lr_forward(x2, w2, b2, block_rows=512))
    ref2 = jax.nn.sigmoid(x2 @ w2 + b2)
    assert out2.shape == (batch2, 1)
    assert jnp.allclose(out2, ref2, atol=3e-3), float(jnp.max(jnp.abs(out2 - ref2)))

    print("KERNEL_OK")
</pallas_src>

<mosaic_0001>
module attributes {stable_mosaic.version = 11 : i64} {
  func.func @lr_kernel(%arg0: i32, %arg1: memref<2x128xf32, #tpu.memory_space<vmem>>, %arg2: memref<128x4xf32, #tpu.memory_space<vmem>>, %arg3: memref<1x1xf32, #tpu.memory_space<smem>>, %arg4: memref<2x4xf32, #tpu.memory_space<vmem>>) attributes {dimension_semantics = [#tpu.dimension_semantics<parallel>], iteration_bounds = array<i64: 1>, scalar_prefetch = 0 : i64, scratch_operands = 0 : i64, tpu.core_type = #tpu.core_type<tc>, window_params = [{transform_indices = @transform_0, window_bounds = array<i64: 2, 128>}, {pipeline_mode = #tpu.pipeline_mode<synchronous>, transform_indices = @transform_1, window_bounds = array<i64: 128, 4>}, {transform_indices = @transform_2, window_bounds = array<i64: 1, 1>}, {transform_indices = @transform_3, window_bounds = array<i64: 2, 4>}]} {
    %c0 = arith.constant 0 : index
    %c0_0 = arith.constant 0 : index
    %0 = vector.load %arg1[%c0, %c0_0] : memref<2x128xf32, #tpu.memory_space<vmem>>, vector<2x128xf32>
    %c0_1 = arith.constant 0 : index
    %c0_2 = arith.constant 0 : index
    %1 = vector.load %arg2[%c0_1, %c0_2] : memref<128x4xf32, #tpu.memory_space<vmem>>, vector<128x4xf32>
    %cst = arith.constant dense<0.000000e+00> : vector<2x4xf32>
    %2 = tpu.matmul %0, %1, %cst {dimension_numbers = #tpu.dot_dimension_numbers<[1], [0], [0], [1], [0, 0, 1, 1], [], []>} : vector<2x128xf32>, vector<128x4xf32>, vector<2x4xf32> -> vector<2x4xf32>
    %c0_3 = arith.constant 0 : index
    %c0_4 = arith.constant 0 : index
    %3 = memref.load %arg3[%c0_3, %c0_4] : memref<1x1xf32, #tpu.memory_space<smem>>
    %4 = vector.broadcast %3 : f32 to vector<2x4xf32>
    %5 = arith.addf %2, %4 : vector<2x4xf32>
    %cst_5 = arith.constant 5.000000e-01 : f32
    %6 = vector.broadcast %cst_5 : f32 to vector<2x4xf32>
    %7 = arith.mulf %6, %5 : vector<2x4xf32>
    %8 = math.tanh %7 : vector<2x4xf32>
    %cst_6 = arith.constant 5.000000e-01 : f32
    %9 = vector.broadcast %cst_6 : f32 to vector<2x4xf32>
    %10 = arith.mulf %9, %8 : vector<2x4xf32>
    %cst_7 = arith.constant 5.000000e-01 : f32
    %11 = vector.broadcast %cst_7 : f32 to vector<2x4xf32>
    %12 = arith.addf %10, %11 : vector<2x4xf32>
    %c0_8 = arith.constant 0 : index
    %c0_9 = arith.constant 0 : index
    %13 = vector.load %arg4[%c0_8, %c0_9] : memref<2x4xf32, #tpu.memory_space<vmem>>, vector<2x4xf32>
    tpu.vector_store %arg4[%c0_8, %c0_9], %12 {strides = array<i32>} : memref<2x4xf32, #tpu.memory_space<vmem>>, vector<2x4xf32>,
    return
  }
  func.func @transform_0(%arg0: i32) -> (i32, i32) {
    %c0_i32 = arith.constant 0 : i32
    %c0_i32_0 = arith.constant 0 : i32
    return %arg0, %c0_i32 : i32, i32
  }
  func.func @transform_1(%arg0: i32) -> (i32, i32) {
    %c0_i32 = arith.constant 0 : i32
    %c0_i32_0 = arith.constant 0 : i32
    %c0_i32_1 = arith.constant 0 : i32
    return %c0_i32, %c0_i32_0 : i32, i32
  }
  func.func @transform_2(%arg0: i32) -> (i32, i32) {
    %c0_i32 = arith.constant 0 : i32
    %c0_i32_0 = arith.constant 0 : i32
    %c0_i32_1 = arith.constant 0 : i32
    return %c0_i32, %c0_i32_0 : i32, i32
  }
  func.func @transform_3(%arg0: i32) -> (i32, i32) {
    %c0_i32 = arith.constant 0 : i32
    %c0_i32_0 = arith.constant 0 : i32
    return %arg0, %c0_i32 : i32, i32
  }
}

</mosaic_0001>

<bundles_post_ra>
// kernel: lr_forward.1
= control target key start
LH: loop header
LB: loop body
LE: loop exit
PB: predicated region body
PF: predicated region fallthrough
CT: control target
= control target key end

     0   :  { %vm58_vm0 = vcmask 25600   ;;  %s143_s1 = inlined_call_operand.vmem [shape: f32[128,4], index: 1, kind: input, shape index: {}]   ;;  %s144_s0 = inlined_call_operand.vmem [shape: f32[2,128], index: 0, kind: input, shape index: {}]   ;;  %s145_s2 = inlined_call_operand.<no memory space> [shape: f32[1,1], index: 2, kind: input, shape index: {}]   ;;  %s146_s3 = inlined_call_operand.vmem [shape: f32[2,4], index: 3, kind: output, shape index: {}]  }
   0x1   :  { %v31_v0 = vld [vmem:[%s143_s1 + $0x78] sm:$0xff]  ;;  %v30_v1 = vld [vmem:[%s143_s1 + $0x70] sm:$0xff]  ;;  %v29_v2 = vld [vmem:[%s143_s1 + $0x68] sm:$0xff]  ;;  %v33_v17 = vstv %s145_s2 }
   0x2   :  { %34 = vmatpush.msra.mxu0 %v31_v0  ;;  %v28_v3 = vld [vmem:[%s143_s1 + $0x60] sm:$0xff]  ;;  %v27_v4 = vld [vmem:[%s143_s1 + $0x58] sm:$0xff]  ;;  %v26_v5 = vld [vmem:[%s143_s1 + $0x50] sm:$0xff] }
   0x3   :  { %v25_v6 = vld [vmem:[%s143_s1 + $0x48] sm:$0xff]  ;;  %v24_v7 = vld [vmem:[%s143_s1 + $0x40] sm:$0xff]  ;;  %v23_v8 = vld [vmem:[%s143_s1 + $0x38] sm:$0xff] }
   0x4   :  { %35 = vmatpush.msra.mxu0 %v30_v1  ;;  %v22_v9 = vld [vmem:[%s143_s1 + $0x30] sm:$0xff]  ;;  %v21_v10 = vld [vmem:[%s143_s1 + $0x28] sm:$0xff]  ;;  %v20_v11 = vld [vmem:[%s143_s1 + $0x20] sm:$0xff] }
   0x5   :  { %v19_v12 = vld [vmem:[%s143_s1 + $0x18] sm:$0xff]  ;;  %v18_v13 = vld [vmem:[%s143_s1 + $0x10] sm:$0xff]  ;;  %v17_v14 = vld [vmem:[%s143_s1 + $0x8] sm:$0xff] }
   0x6   :  { %36 = vmatpush.msra.mxu0 %v29_v2  ;;  %v16_v15 = vld [vmem:[%s143_s1] sm:$0xff] }
   0x7   :  { %v15_v16 = vld [vmem:[%s144_s0] sm:$0x3] }
   0x8   :  { %37 = vmatpush.msra.mxu0 %v28_v3 }
   0xa   :  { %38 = vmatpush.msra.mxu0 %v27_v4 }
   0xc   :  { %39 = vmatpush.msra.mxu0 %v26_v5 }
   0xe   :  { %40 = vmatpush.msra.mxu0 %v25_v6 }
  0x10   :  { %41 = vmatpush.msra.mxu0 %v24_v7 }
  0x12   :  { %42 = vmatpush.msra.mxu0 %v23_v8 }
  0x14   :  { %43 = vmatpush.msra.mxu0 %v22_v9 }
  0x16   :  { %44 = vmatpush.msra.mxu0 %v21_v10 }
  0x18   :  { %45 = vmatpush.msra.mxu0 %v20_v11 }
  0x1a   :  { %46 = vmatpush.msra.mxu0 %v19_v12 }
  0x1c   :  { %47 = vmatpush.msra.mxu0 %v18_v13 }
  0x1e   :  { %48 = vmatpush.msra.mxu0 %v17_v14 }
  0x20   :  { %49 = vmatpush.msra.mxu0 %v16_v15 }
  0x21   :  { %50 = vmatmul.f32.vlgmr.msra.gmra.mxu0 %v15_v16 }
  0x9e   :  { %v51_v18 = vpop.f32.mrf.mxu0 }
  0x9f   :  { %v52_v19 = vadd.f32 %v51_v18, %v33_v17 }
  0xa1   :  { %v54_v20 = vmul.f32 0.5, %v52_v19 }
  0xa3   :  { %64 = vtanh.f32 %v54_v20 }
  0xa9   :  { %v65_v21 = vpop.eup %64 }
  0xaa   :  { %v56_v22 = vmul.f32 0.5, %v65_v21 }
  0xac   :  { %v57_v23 = vadd.f32 0.5, %v56_v22 }
  0xae   :  { %59 = vst.msk [vmem:[%s146_s3] sm:$0x3] %vm58_vm0, %v57_v23 }

</bundles_post_ra>
